<compile_context>
chip_gen: v7x
topology: tpu7x:2x2x1
jax: 0.10.0
libtpu: 0.0.40
codegen_flags: <defaults>
</compile_context>

<pallas_src>
import functools

import jax
import jax.numpy as jnp
from jax.experimental import pallas as pl
from jax.experimental.pallas import tpu as pltpu

ALPHAS = (0.05, 0.2, 0.9)

# Precomputed coefficients of  sum_a a^2/(a^2+d) = P(d)/Q(d):
#   P(d) = S1*d^2 + 2*S2*d + 3*S3,   Q(d) = d^3 + S1*d^2 + S2*d + S3
_B1, _B2, _B3 = (a * a for a in ALPHAS)
_S1 = _B1 + _B2 + _B3
_S2 = _B1 * _B2 + _B1 * _B3 + _B2 * _B3
_S3 = _B1 * _B2 * _B3

# Squared-norm value assigned to zero-padded rows: makes their pairwise
# distances huge so their kernel terms vanish / cancel exactly, without any
# in-kernel masking.  (Kept modest so d^3 stays far from f32 overflow.)
_PAD_SQ = 1.0e6

_VMEM_TILE_BUDGET = 40 * (1 << 20)   # budget used when auto-picking the tile


def _ceil_to(x, m):
    return ((x + m - 1) // m) * m


def _vmem_estimate_bytes(bsz, d):
    """Rough VMEM footprint: double-buffered x/y blocks (both grid roles),
    norm blocks, output block, accumulator, and tile-sized f32 temporaries."""
    blocks = 2 * 4 * bsz * d * 4          # 4 (B,D) inputs, double-buffered
    norms = 2 * 4 * 2 * bsz * 4
    out = 2 * 8 * bsz * 4 + 8 * bsz * 4
    temps = 10 * bsz * bsz * 4            # dxx/dyy/dxy/fxx/... headroom
    return blocks + norms + out + temps


def _alpha_sum(d):
    """sum_a a^2/(a^2+d) as one rational function + one EUP reciprocal."""
    p = (_S1 * d + (2.0 * _S2)) * d + (3.0 * _S3)
    q = ((d + _S1) * d + _S2) * d + _S3
    r = pl.reciprocal(q, approx=True)
    r = r * (2.0 - q * r)                 # one Newton step -> ~f32 accuracy
    return p * r


def _fold_rows(t, bm, bn):
    """(bm, bn) -> (8, bn) by summing 8-row slices (pure VPU vreg adds)."""
    acc = t[0:8, :]
    for k in range(1, bm // 8):
        acc = acc + t[k * 8:(k + 1) * 8, :]
    return acc


def _mmd_kernel(xi_ref, yi_ref, xj_ref, yj_ref,
                sqxi_ref, sqyi_ref, sqxj_ref, sqyj_ref,
                out_ref, acc_ref, *, bm, bn, n_valid):
    """One (bm, bn) tile of the pairwise kernel sum, accumulated per i-row."""
    i = pl.program_id(0)
    j = pl.program_id(1)

    # Fresh accumulator for every i-row (axis 0 may be split across cores).
    @pl.when(j == 0)
    def _():
        acc_ref[...] = jnp.zeros_like(acc_ref)

    xi = xi_ref[...]          # (bm, D)
    yi = yi_ref[...]          # (bm, D)
    xj = xj_ref[...]          # (bn, D)
    yj = yj_ref[...]          # (bn, D)

    # Gram tiles on the MXU; NT contraction (contract last dim of both) so no
    # explicit transpose of the j-side operands is materialized.
    nt = (((1,), (1,)), ((), ()))
    xx = jax.lax.dot_general(xi, xj, nt, preferred_element_type=jnp.float32)
    yy = jax.lax.dot_general(yi, yj, nt, preferred_element_type=jnp.float32)
    zz = jax.lax.dot_general(xi, yj, nt, preferred_element_type=jnp.float32)

    sqx_i = sqxi_ref[...]     # (bm, 1)  precomputed |x_i|^2 (PAD_SQ on pads)
    sqy_i = sqyi_ref[...]     # (bm, 1)
    sqx_j = sqxj_ref[...]     # (1, bn)
    sqy_j = sqyj_ref[...]     # (1, bn)

    # Pairwise squared distances for this tile.
    dxx = (sqx_i + sqx_j) - 2.0 * xx
    dyy = (sqy_i + sqy_j) - 2.0 * yy
    dxy = (sqx_i + sqy_j) - 2.0 * zz

    fxx = _alpha_sum(dxx)
    fyy = _alpha_sum(dyy)
    fxy = _alpha_sum(dxy)
    tile = (fxx + fyy) - 2.0 * fxy

    acc_ref[...] += _fold_rows(tile, bm, bn)

    # Diagonal correction: dxx/dyy are exactly 0 on the global diagonal in the
    # reference (it reads diag(xx)), so XX and YY contribute exactly 3 there.
    # Only diagonal tiles (bm == bn, i == j) can contain global-diagonal
    # elements, so interior tiles skip this entirely.
    @pl.when(i == j)
    def _():
        row = jax.lax.broadcasted_iota(jnp.int32, (bm, bn), 0)
        col = jax.lax.broadcasted_iota(jnp.int32, (bm, bn), 1)
        on_diag = jnp.logical_and(row == col, (i * bm + row) < n_valid)
        corr = jnp.where(on_diag, (3.0 - fxx) + (3.0 - fyy), 0.0)
        acc_ref[...] += _fold_rows(corr, bm, bn)

    # Flush the per-i-row partial once, at the last j step.
    @pl.when(j == pl.num_programs(1) - 1)
    def _():
        out_ref[0] = acc_ref[...]


def mmd_loss(pred, target, loss_weight=1.0, reduction='mean',
             loss_weight_override=None, reduction_override=None,
             block_size=None):
    """JAX/Pallas equivalent of MMDLoss.forward."""
    assert reduction_override in (None, 'none', 'mean', 'sum')
    reduction = reduction_override if reduction_override else reduction
    assert reduction in ('none', 'mean', 'sum')
    loss_weight = (loss_weight_override if loss_weight_override is not None
                   else loss_weight)

    assert pred.ndim == 2 and pred.shape == target.shape
    n, d = pred.shape
    n8 = _ceil_to(n, 8)

    # Tile selection.  Square tiles (bm == bn == B) so only i == j tiles can
    # contain global-diagonal elements.
    if block_size is not None:
        assert block_size % 128 == 0, "explicit block_size must be a multiple of 128"
        B = block_size
        n_pad = _ceil_to(n, B)
    elif n8 <= 256:
        B = n_pad = n8                       # single-tile path (block == array)
    else:
        n_pad = _ceil_to(n, 128)
        B = 128
        for cand in (512, 256):              # biggest tile that fits the budget
            if n_pad % cand == 0 and _vmem_estimate_bytes(cand, d) <= _VMEM_TILE_BUDGET:
                B = cand
                break

    est = _vmem_estimate_bytes(B, d)
    vmem_limit = int(min(64 << 20, max(32 << 20, int(1.25 * est))))

    x = pred.astype(jnp.float32)
    y = target.astype(jnp.float32)

    # Row squared-norms precomputed once (O(N*D)); padded rows get a large
    # constant so their contributions vanish without an in-kernel mask.
    sqx = jnp.sum(x * x, axis=1)
    sqy = jnp.sum(y * y, axis=1)
    if n_pad != n:
        pad = n_pad - n
        x = jnp.pad(x, ((0, pad), (0, 0)))
        y = jnp.pad(y, ((0, pad), (0, 0)))
        big = jnp.full((pad,), _PAD_SQ, dtype=jnp.float32)
        sqx = jnp.concatenate([sqx, big])
        sqy = jnp.concatenate([sqy, big])
    sqx_col, sqx_row = sqx[:, None], sqx[None, :]
    sqy_col, sqy_row = sqy[:, None], sqy[None, :]

    grid_m = n_pad // B
    grid = (grid_m, grid_m)
    kernel = functools.partial(_mmd_kernel, bm=B, bn=B, n_valid=n)

    partials = pl.pallas_call(
        kernel,
        out_shape=jax.ShapeDtypeStruct((grid_m, 8, B), jnp.float32),
        grid_spec=pltpu.PrefetchScalarGridSpec(
            num_scalar_prefetch=0,
            grid=grid,
            in_specs=[
                pl.BlockSpec((B, d), lambda i, j: (i, 0)),   # x, i-block rows
                pl.BlockSpec((B, d), lambda i, j: (i, 0)),   # y, i-block rows
                pl.BlockSpec((B, d), lambda i, j: (j, 0)),   # x, j-block rows
                pl.BlockSpec((B, d), lambda i, j: (j, 0)),   # y, j-block rows
                pl.BlockSpec((B, 1), lambda i, j: (i, 0)),   # |x_i|^2 column
                pl.BlockSpec((B, 1), lambda i, j: (i, 0)),   # |y_i|^2 column
                pl.BlockSpec((1, B), lambda i, j: (0, j)),   # |x_j|^2 row
                pl.BlockSpec((1, B), lambda i, j: (0, j)),   # |y_j|^2 row
            ],
            out_specs=pl.BlockSpec((1, 8, B), lambda i, j: (i, 0, 0)),
            scratch_shapes=[pltpu.VMEM((8, B), jnp.float32)],
        ),
        # Axis 0 (i-row blocks) is independent -> 'parallel' (v7x megacore);
        # axis 1 (j) reduces into the per-row scratch -> 'arbitrary'.
        compiler_params=pltpu.CompilerParams(
            dimension_semantics=("parallel", "arbitrary"),
            vmem_limit_bytes=vmem_limit),
    )(x, y, x, y, sqx_col, sqy_col, sqx_row, sqy_row)

    loss = jnp.sum(partials) * (1.0 / float(n * n))
    # The torch module computes a scalar MMD; 'mean'/'sum'/'none' over a
    # scalar are all the identity, so all reductions return the same value.
    return loss * loss_weight


def _mmd_reference(x, y):
    """Pure-JAX reference mirroring the torch code, for verification."""
    x = x.astype(jnp.float32)
    y = y.astype(jnp.float32)
    hi = jax.lax.Precision.HIGHEST
    xx = jnp.matmul(x, x.T, precision=hi)
    yy = jnp.matmul(y, y.T, precision=hi)
    zz = jnp.matmul(x, y.T, precision=hi)
    rx = jnp.diag(xx)[None, :]
    ry = jnp.diag(yy)[None, :]
    dxx = rx.T + rx - 2.0 * xx
    dyy = ry.T + ry - 2.0 * yy
    dxy = rx.T + ry - 2.0 * zz
    XX = YY = XY = jnp.zeros_like(xx)
    for a in ALPHAS:
        XX = XX + a**2 * (a**2 + dxx) ** (-1)
        YY = YY + a**2 * (a**2 + dyy) ** (-1)
        XY = XY + a**2 * (a**2 + dxy) ** (-1)
    return jnp.mean(XX + YY - 2.0 * XY)


if __name__ == "__main__":
    key = jax.random.PRNGKey(0)
    k1, k2 = jax.random.split(key)

    # Case 1: tiny input, single-tile path (block == full array dims).
    N1, D1 = 8, 32
    pred1 = jax.random.normal(k1, (N1, D1), dtype=jnp.float32)
    targ1 = jax.random.normal(k2, (N1, D1), dtype=jnp.float32) + 0.5
    out1 = jax.block_until_ready(mmd_loss(pred1, targ1))
    ref1 = _mmd_reference(pred1, targ1)
    assert jnp.allclose(out1, ref1, atol=1e-5, rtol=1e-4), (out1, ref1)

    # Case 2: non-multiple N -> 2x2 tiled grid with zero-padding (200 -> 256),
    # exercising the parallel i axis, the PAD_SQ padding trick, the diagonal
    # correction on i==j tiles, and the per-i partial outputs.
    k3, k4 = jax.random.split(k2)
    N2, D2 = 200, 32
    pred2 = jax.random.normal(k3, (N2, D2), dtype=jnp.float32)
    targ2 = jax.random.normal(k4, (N2, D2), dtype=jnp.float32) + 0.5
    out2 = jax.block_until_ready(mmd_loss(pred2, targ2, block_size=128))
    ref2 = _mmd_reference(pred2, targ2)
    assert jnp.allclose(out2, ref2, atol=1e-5, rtol=1e-4), (out2, ref2)

    print("KERNEL_OK")
</pallas_src>

<mosaic_0001>
module attributes {stable_mosaic.version = 11 : i64} {
  func.func @_mmd_kernel(%arg0: i32, %arg1: i32, %arg2: memref<8x32xf32, #tpu.memory_space<vmem>>, %arg3: memref<8x32xf32, #tpu.memory_space<vmem>>, %arg4: memref<8x32xf32, #tpu.memory_space<vmem>>, %arg5: memref<8x32xf32, #tpu.memory_space<vmem>>, %arg6: memref<8x1xf32, #tpu.memory_space<vmem>>, %arg7: memref<8x1xf32, #tpu.memory_space<vmem>>, %arg8: memref<1x8xf32, #tpu.memory_space<vmem>>, %arg9: memref<1x8xf32, #tpu.memory_space<vmem>>, %arg10: memref<1x8x8xf32, #tpu.memory_space<vmem>>, %arg11: memref<8x8xf32, #tpu.memory_space<vmem>>) attributes {dimension_semantics = [#tpu.dimension_semantics<parallel>, #tpu.dimension_semantics<arbitrary>], iteration_bounds = array<i64: 1, 1>, scalar_prefetch = 0 : i64, scratch_operands = 1 : i64, tpu.core_type = #tpu.core_type<tc>, window_params = [{transform_indices = @transform_0, window_bounds = array<i64: 8, 32>}, {transform_indices = @transform_1, window_bounds = array<i64: 8, 32>}, {transform_indices = @transform_2, window_bounds = array<i64: 8, 32>}, {transform_indices = @transform_3, window_bounds = array<i64: 8, 32>}, {transform_indices = @transform_4, window_bounds = array<i64: 8, 1>}, {transform_indices = @transform_5, window_bounds = array<i64: 8, 1>}, {transform_indices = @transform_6, window_bounds = array<i64: 1, 8>}, {transform_indices = @transform_7, window_bounds = array<i64: 1, 8>}, {transform_indices = @transform_8, window_bounds = array<i64: 1, 8, 8>}]} {
    %c0_i32 = arith.constant 0 : i32
    %0 = arith.cmpi eq, %arg1, %c0_i32 : i32
    %1 = arith.extui %0 : i1 to i32
    %c0_i32_0 = arith.constant 0 : i32
    %2 = arith.cmpi ne, %1, %c0_i32_0 : i32
    scf.if %2 {
      %cst_50 = arith.constant 0.000000e+00 : f32
      %108 = vector.broadcast %cst_50 : f32 to vector<8x8xf32>
      %c0_51 = arith.constant 0 : index
      %c0_52 = arith.constant 0 : index
      %109 = vector.load %arg11[%c0_51, %c0_52] : memref<8x8xf32, #tpu.memory_space<vmem>>, vector<8x8xf32>
      tpu.vector_store %arg11[%c0_51, %c0_52], %108 {strides = array<i32>} : memref<8x8xf32, #tpu.memory_space<vmem>>, vector<8x8xf32>,
    } else {
    }
    %c0 = arith.constant 0 : index
    %c0_1 = arith.constant 0 : index
    %3 = vector.load %arg2[%c0, %c0_1] : memref<8x32xf32, #tpu.memory_space<vmem>>, vector<8x32xf32>
    %c0_2 = arith.constant 0 : index
    %c0_3 = arith.constant 0 : index
    %4 = vector.load %arg3[%c0_2, %c0_3] : memref<8x32xf32, #tpu.memory_space<vmem>>, vector<8x32xf32>
    %c0_4 = arith.constant 0 : index
    %c0_5 = arith.constant 0 : index
    %5 = vector.load %arg4[%c0_4, %c0_5] : memref<8x32xf32, #tpu.memory_space<vmem>>, vector<8x32xf32>
    %c0_6 = arith.constant 0 : index
    %c0_7 = arith.constant 0 : index
    %6 = vector.load %arg5[%c0_6, %c0_7] : memref<8x32xf32, #tpu.memory_space<vmem>>, vector<8x32xf32>
    %cst = arith.constant dense<0.000000e+00> : vector<8x8xf32>
    %7 = tpu.matmul %3, %5, %cst {dimension_numbers = #tpu.dot_dimension_numbers<[1], [1], [0], [0], [0, 0, 1, 0], [], []>} : vector<8x32xf32>, vector<8x32xf32>, vector<8x8xf32> -> vector<8x8xf32>
    %cst_8 = arith.constant dense<0.000000e+00> : vector<8x8xf32>
    %8 = tpu.matmul %4, %6, %cst_8 {dimension_numbers = #tpu.dot_dimension_numbers<[1], [1], [0], [0], [0, 0, 1, 0], [], []>} : vector<8x32xf32>, vector<8x32xf32>, vector<8x8xf32> -> vector<8x8xf32>
    %cst_9 = arith.constant dense<0.000000e+00> : vector<8x8xf32>
    %9 = tpu.matmul %3, %6, %cst_9 {dimension_numbers = #tpu.dot_dimension_numbers<[1], [1], [0], [0], [0, 0, 1, 0], [], []>} : vector<8x32xf32>, vector<8x32xf32>, vector<8x8xf32> -> vector<8x8xf32>
    %c0_10 = arith.constant 0 : index
    %c0_11 = arith.constant 0 : index
    %10 = vector.load %arg6[%c0_10, %c0_11] : memref<8x1xf32, #tpu.memory_space<vmem>>, vector<8x1xf32>
    %c0_12 = arith.constant 0 : index
    %c0_13 = arith.constant 0 : index
    %11 = vector.load %arg7[%c0_12, %c0_13] : memref<8x1xf32, #tpu.memory_space<vmem>>, vector<8x1xf32>
    %c0_14 = arith.constant 0 : index
    %c0_15 = arith.constant 0 : index
    %12 = vector.load %arg8[%c0_14, %c0_15] : memref<1x8xf32, #tpu.memory_space<vmem>>, vector<1x8xf32>
    %c0_16 = arith.constant 0 : index
    %c0_17 = arith.constant 0 : index
    %13 = vector.load %arg9[%c0_16, %c0_17] : memref<1x8xf32, #tpu.memory_space<vmem>>, vector<1x8xf32>
    %14 = vector.broadcast %10 : vector<8x1xf32> to vector<8x8xf32>
    %15 = vector.broadcast %12 : vector<1x8xf32> to vector<8x8xf32>
    %16 = arith.addf %14, %15 : vector<8x8xf32>
    %cst_18 = arith.constant 2.000000e+00 : f32
    %17 = vector.broadcast %cst_18 : f32 to vector<8x8xf32>
    %18 = arith.mulf %17, %7 : vector<8x8xf32>
    %19 = arith.subf %16, %18 : vector<8x8xf32>
    %20 = vector.broadcast %11 : vector<8x1xf32> to vector<8x8xf32>
    %21 = vector.broadcast %13 : vector<1x8xf32> to vector<8x8xf32>
    %22 = arith.addf %20, %21 : vector<8x8xf32>
    %cst_19 = arith.constant 2.000000e+00 : f32
    %23 = vector.broadcast %cst_19 : f32 to vector<8x8xf32>
    %24 = arith.mulf %23, %8 : vector<8x8xf32>
    %25 = arith.subf %22, %24 : vector<8x8xf32>
    %26 = vector.broadcast %10 : vector<8x1xf32> to vector<8x8xf32>
    %27 = vector.broadcast %13 : vector<1x8xf32> to vector<8x8xf32>
    %28 = arith.addf %26, %27 : vector<8x8xf32>
    %cst_20 = arith.constant 2.000000e+00 : f32
    %29 = vector.broadcast %cst_20 : f32 to vector<8x8xf32>
    %30 = arith.mulf %29, %9 : vector<8x8xf32>
    %31 = arith.subf %28, %30 : vector<8x8xf32>
    %cst_21 = arith.constant 8.525000e-01 : f32
    %32 = vector.broadcast %cst_21 : f32 to vector<8x8xf32>
    %33 = arith.mulf %32, %19 : vector<8x8xf32>
    %cst_22 = arith.constant 6.905000e-02 : f32
    %34 = vector.broadcast %cst_22 : f32 to vector<8x8xf32>
    %35 = arith.addf %33, %34 : vector<8x8xf32>
    %36 = arith.mulf %35, %19 : vector<8x8xf32>
    %cst_23 = arith.constant 2.430000e-04 : f32
    %37 = vector.broadcast %cst_23 : f32 to vector<8x8xf32>
    %38 = arith.addf %36, %37 : vector<8x8xf32>
    %cst_24 = arith.constant 8.525000e-01 : f32
    %39 = vector.broadcast %cst_24 : f32 to vector<8x8xf32>
    %40 = arith.addf %19, %39 : vector<8x8xf32>
    %41 = arith.mulf %40, %19 : vector<8x8xf32>
    %cst_25 = arith.constant 3.452500e-02 : f32
    %42 = vector.broadcast %cst_25 : f32 to vector<8x8xf32>
    %43 = arith.addf %41, %42 : vector<8x8xf32>
    %44 = arith.mulf %43, %19 : vector<8x8xf32>
    %cst_26 = arith.constant 8.09999983E-5 : f32
    %45 = vector.broadcast %cst_26 : f32 to vector<8x8xf32>
    %46 = arith.addf %44, %45 : vector<8x8xf32>
    %47 = tpu.reciprocal %46 {approx = true} : vector<8x8xf32> -> vector<8x8xf32>
    %48 = arith.mulf %46, %47 : vector<8x8xf32>
    %cst_27 = arith.constant 2.000000e+00 : f32
    %49 = vector.broadcast %cst_27 : f32 to vector<8x8xf32>
    %50 = arith.subf %49, %48 : vector<8x8xf32>
    %51 = arith.mulf %47, %50 : vector<8x8xf32>
    %52 = arith.mulf %38, %51 : vector<8x8xf32>
    %cst_28 = arith.constant 8.525000e-01 : f32
    %53 = vector.broadcast %cst_28 : f32 to vector<8x8xf32>
    %54 = arith.mulf %53, %25 : vector<8x8xf32>
    %cst_29 = arith.constant 6.905000e-02 : f32
    %55 = vector.broadcast %cst_29 : f32 to vector<8x8xf32>
    %56 = arith.addf %54, %55 : vector<8x8xf32>
    %57 = arith.mulf %56, %25 : vector<8x8xf32>
    %cst_30 = arith.constant 2.430000e-04 : f32
    %58 = vector.broadcast %cst_30 : f32 to vector<8x8xf32>
    %59 = arith.addf %57, %58 : vector<8x8xf32>
    %cst_31 = arith.constant 8.525000e-01 : f32
    %60 = vector.broadcast %cst_31 : f32 to vector<8x8xf32>
    %61 = arith.addf %25, %60 : vector<8x8xf32>
    %62 = arith.mulf %61, %25 : vector<8x8xf32>
    %cst_32 = arith.constant 3.452500e-02 : f32
    %63 = vector.broadcast %cst_32 : f32 to vector<8x8xf32>
    %64 = arith.addf %62, %63 : vector<8x8xf32>
    %65 = arith.mulf %64, %25 : vector<8x8xf32>
    %cst_33 = arith.constant 8.09999983E-5 : f32
    %66 = vector.broadcast %cst_33 : f32 to vector<8x8xf32>
    %67 = arith.addf %65, %66 : vector<8x8xf32>
    %68 = tpu.reciprocal %67 {approx = true} : vector<8x8xf32> -> vector<8x8xf32>
    %69 = arith.mulf %67, %68 : vector<8x8xf32>
    %cst_34 = arith.constant 2.000000e+00 : f32
    %70 = vector.broadcast %cst_34 : f32 to vector<8x8xf32>
    %71 = arith.subf %70, %69 : vector<8x8xf32>
    %72 = arith.mulf %68, %71 : vector<8x8xf32>
    %73 = arith.mulf %59, %72 : vector<8x8xf32>
    %cst_35 = arith.constant 8.525000e-01 : f32
    %74 = vector.broadcast %cst_35 : f32 to vector<8x8xf32>
    %75 = arith.mulf %74, %31 : vector<8x8xf32>
    %cst_36 = arith.constant 6.905000e-02 : f32
    %76 = vector.broadcast %cst_36 : f32 to vector<8x8xf32>
    %77 = arith.addf %75, %76 : vector<8x8xf32>
    %78 = arith.mulf %77, %31 : vector<8x8xf32>
    %cst_37 = arith.constant 2.430000e-04 : f32
    %79 = vector.broadcast %cst_37 : f32 to vector<8x8xf32>
    %80 = arith.addf %78, %79 : vector<8x8xf32>
    %cst_38 = arith.constant 8.525000e-01 : f32
    %81 = vector.broadcast %cst_38 : f32 to vector<8x8xf32>
    %82 = arith.addf %31, %81 : vector<8x8xf32>
    %83 = arith.mulf %82, %31 : vector<8x8xf32>
    %cst_39 = arith.constant 3.452500e-02 : f32
    %84 = vector.broadcast %cst_39 : f32 to vector<8x8xf32>
    %85 = arith.addf %83, %84 : vector<8x8xf32>
    %86 = arith.mulf %85, %31 : vector<8x8xf32>
    %cst_40 = arith.constant 8.09999983E-5 : f32
    %87 = vector.broadcast %cst_40 : f32 to vector<8x8xf32>
    %88 = arith.addf %86, %87 : vector<8x8xf32>
    %89 = tpu.reciprocal %88 {approx = true} : vector<8x8xf32> -> vector<8x8xf32>
    %90 = arith.mulf %88, %89 : vector<8x8xf32>
    %cst_41 = arith.constant 2.000000e+00 : f32
    %91 = vector.broadcast %cst_41 : f32 to vector<8x8xf32>
    %92 = arith.subf %91, %90 : vector<8x8xf32>
    %93 = arith.mulf %89, %92 : vector<8x8xf32>
    %94 = arith.mulf %80, %93 : vector<8x8xf32>
    %95 = arith.addf %52, %73 : vector<8x8xf32>
    %cst_42 = arith.constant 2.000000e+00 : f32
    %96 = vector.broadcast %cst_42 : f32 to vector<8x8xf32>
    %97 = arith.mulf %96, %94 : vector<8x8xf32>
    %98 = arith.subf %95, %97 : vector<8x8xf32>
    %c0_43 = arith.constant 0 : index
    %c0_44 = arith.constant 0 : index
    %99 = vector.load %arg11[%c0_43, %c0_44] : memref<8x8xf32, #tpu.memory_space<vmem>>, vector<8x8xf32>
    %100 = arith.addf %99, %98 : vector<8x8xf32>
    %c0_45 = arith.constant 0 : index
    %c0_46 = arith.constant 0 : index
    %101 = vector.load %arg11[%c0_45, %c0_46] : memref<8x8xf32, #tpu.memory_space<vmem>>, vector<8x8xf32>
    tpu.vector_store %arg11[%c0_45, %c0_46], %100 {strides = array<i32>} : memref<8x8xf32, #tpu.memory_space<vmem>>, vector<8x8xf32>,
    %102 = arith.cmpi eq, %arg0, %arg1 : i32
    %103 = arith.extui %102 : i1 to i32
    %c0_i32_47 = arith.constant 0 : i32
    %104 = arith.cmpi ne, %103, %c0_i32_47 : i32
    scf.if %104 {
      %108 = tpu.iota {dimensions = array<i32: 0>} : vector<8x8xi32>
      %109 = tpu.iota {dimensions = array<i32: 1>} : vector<8x8xi32>
      %110 = arith.cmpi eq, %108, %109 : vector<8x8xi32>
      %c8_i32 = arith.constant 8 : i32
      %111 = arith.muli %arg0, %c8_i32 : i32
      %112 = vector.broadcast %111 : i32 to vector<8x8xi32>
      %113 = arith.addi %112, %108 : vector<8x8xi32>
      %c8_i32_50 = arith.constant 8 : i32
      %114 = vector.broadcast %c8_i32_50 : i32 to vector<8x8xi32>
      %115 = arith.cmpi slt, %113, %114 : vector<8x8xi32>
      %116 = arith.andi %110, %115 : vector<8x8xi1>
      %cst_51 = arith.constant 3.000000e+00 : f32
      %117 = vector.broadcast %cst_51 : f32 to vector<8x8xf32>
      %118 = arith.subf %117, %52 : vector<8x8xf32>
      %cst_52 = arith.constant 3.000000e+00 : f32
      %119 = vector.broadcast %cst_52 : f32 to vector<8x8xf32>
      %120 = arith.subf %119, %73 : vector<8x8xf32>
      %121 = arith.addf %118, %120 : vector<8x8xf32>
      %cst_53 = arith.constant 0.000000e+00 : f32
      %122 = vector.broadcast %cst_53 : f32 to vector<8x8xf32>
      %123 = arith.select %116, %121, %122 : vector<8x8xi1>, vector<8x8xf32>
      %c0_54 = arith.constant 0 : index
      %c0_55 = arith.constant 0 : index
      %124 = vector.load %arg11[%c0_54, %c0_55] : memref<8x8xf32, #tpu.memory_space<vmem>>, vector<8x8xf32>
      %125 = arith.addf %124, %123 : vector<8x8xf32>
      %c0_56 = arith.constant 0 : index
      %c0_57 = arith.constant 0 : index
      %126 = vector.load %arg11[%c0_56, %c0_57] : memref<8x8xf32, #tpu.memory_space<vmem>>, vector<8x8xf32>
      tpu.vector_store %arg11[%c0_56, %c0_57], %125 {strides = array<i32>} : memref<8x8xf32, #tpu.memory_space<vmem>>, vector<8x8xf32>,
    } else {
    }
    %c0_i32_48 = arith.constant 0 : i32
    %105 = arith.cmpi eq, %arg1, %c0_i32_48 : i32
    %106 = arith.extui %105 : i1 to i32
    %c0_i32_49 = arith.constant 0 : i32
    %107 = arith.cmpi ne, %106, %c0_i32_49 : i32
    scf.if %107 {
      %c0_50 = arith.constant 0 : index
      %c0_51 = arith.constant 0 : index
      %108 = vector.load %arg11[%c0_50, %c0_51] : memref<8x8xf32, #tpu.memory_space<vmem>>, vector<8x8xf32>
      %c0_52 = arith.constant 0 : index
      %c0_53 = arith.constant 0 : index
      %c0_54 = arith.constant 0 : index
      %109 = vector.load %arg10[%c0_52, %c0_53, %c0_54] : memref<1x8x8xf32, #tpu.memory_space<vmem>>, vector<1x8x8xf32>
      %110 = vector.shape_cast %109 : vector<1x8x8xf32> to vector<8x8xf32>
      %111 = vector.shape_cast %108 : vector<8x8xf32> to vector<1x8x8xf32>
      tpu.vector_store %arg10[%c0_52, %c0_53, %c0_54], %111 {strides = array<i32>} : memref<1x8x8xf32, #tpu.memory_space<vmem>>, vector<1x8x8xf32>,
    } else {
    }
    return
  }
  func.func @transform_0(%arg0: i32, %arg1: i32) -> (i32, i32) {
    %c0_i32 = arith.constant 0 : i32
    %c0_i32_0 = arith.constant 0 : i32
    return %arg0, %c0_i32 : i32, i32
  }
  func.func @transform_1(%arg0: i32, %arg1: i32) -> (i32, i32) {
    %c0_i32 = arith.constant 0 : i32
    %c0_i32_0 = arith.constant 0 : i32
    return %arg0, %c0_i32 : i32, i32
  }
  func.func @transform_2(%arg0: i32, %arg1: i32) -> (i32, i32) {
    %c0_i32 = arith.constant 0 : i32
    %c0_i32_0 = arith.constant 0 : i32
    return %arg1, %c0_i32 : i32, i32
  }
  func.func @transform_3(%arg0: i32, %arg1: i32) -> (i32, i32) {
    %c0_i32 = arith.constant 0 : i32
    %c0_i32_0 = arith.constant 0 : i32
    return %arg1, %c0_i32 : i32, i32
  }
  func.func @transform_4(%arg0: i32, %arg1: i32) -> (i32, i32) {
    %c0_i32 = arith.constant 0 : i32
    %c0_i32_0 = arith.constant 0 : i32
    return %arg0, %c0_i32 : i32, i32
  }
  func.func @transform_5(%arg0: i32, %arg1: i32) -> (i32, i32) {
    %c0_i32 = arith.constant 0 : i32
    %c0_i32_0 = arith.constant 0 : i32
    return %arg0, %c0_i32 : i32, i32
  }
  func.func @transform_6(%arg0: i32, %arg1: i32) -> (i32, i32) {
    %c0_i32 = arith.constant 0 : i32
    %c0_i32_0 = arith.constant 0 : i32
    return %c0_i32, %arg1 : i32, i32
  }
  func.func @transform_7(%arg0: i32, %arg1: i32) -> (i32, i32) {
    %c0_i32 = arith.constant 0 : i32
    %c0_i32_0 = arith.constant 0 : i32
    return %c0_i32, %arg1 : i32, i32
  }
  func.func @transform_8(%arg0: i32, %arg1: i32) -> (i32, i32, i32) {
    %c0_i32 = arith.constant 0 : i32
    %c0_i32_0 = arith.constant 0 : i32
    %c0_i32_1 = arith.constant 0 : i32
    return %arg0, %c0_i32, %c0_i32_0 : i32, i32, i32
  }
}

</mosaic_0001>

<bundles_post_ra>
// kernel: tpu_custom_call.1
= control target key start
LH: loop header
LB: loop body
LE: loop exit
PB: predicated region body
PF: predicated region fallthrough
CT: control target
= control target key end

     0   :  { %13 = vsyncpa [#allocation4], 0  ;;  %s597_s0 = inlined_call_operand.vmem [shape: f32[8,32], index: 0, kind: input, shape index: {}]   ;;  %s598_s1 = inlined_call_operand.vmem [shape: f32[8,32], index: 1, kind: input, shape index: {}]   ;;  %s599_s2 = inlined_call_operand.vmem [shape: f32[8,32], index: 2, kind: input, shape index: {}]   ;;  %s600_s3 = inlined_call_operand.hbm [shape: f32[8,32], index: 3, kind: input, shape index: {}]   ;;  %s601_s4 = inlined_call_operand.vmem [shape: f32[8,1], index: 4, kind: input, shape index: {}]   ;;  %s602_s5 = inlined_call_operand.vmem [shape: f32[8,1], index: 5, kind: input, shape index: {}]   ;;  %s603_s6 = inlined_call_operand.vmem [shape: f32[1,8], index: 6, kind: input, shape index: {}]   ;;  %s604_s7 = inlined_call_operand.vmem [shape: f32[1,8], index: 7, kind: input, shape index: {}]   ;;  %s605_s8 = inlined_call_operand.hbm [shape: f32[1,8,8], index: 8, kind: output, shape index: {}]  }
   0x1   :  { %14 = vsyncpa [#allocation5], 0  ;;  %s489_s27 = smov [#allocation3]   ;;  %s441_s9 = scalar_lea.hbm %s600_s3, 128 }
   0x2   :  { %s27_s28 = sshll.u32 %s489_s27, 4  ;;  %p442_p0 = scmp.ne.s32.totalorder %s600_s3, %s441_s9  ;;  %s28_s28 = int_to_ptr.vmem [resolvable:$true] %s27_s28 }
   0x3   :  { %p445_p1 = scmp.lt.u32.totalorder %s441_s9, %s600_s3 }
   0x5   :  { %p447_p2 = pnand %p445_p1, %p442_p0 }
   0x7   :  { %450 = shalt.err (!%p447_p2)
}
   0x8   :  { %s451_s14 = scalar_lea.vmem %s28_s28, 128  ;;  %p456_p4 = scmp.lt.s32.totalorder %s28_s28, %s28_s28 }
   0x9   :  { %p452_p3 = scmp.ne.s32.totalorder %s28_s28, %s451_s14  ;;  %p457_p5 = scmp.lt.s32.totalorder %s451_s14, %s451_s14 }
   0xb   :  { %p458_p6 = por %p457_p5, %p456_p4 }
   0xd   :  { %p459_p7 = pnand %p458_p6, %p452_p3 }
   0xf   :  { %462 = shalt.err (!%p459_p7)
}
  0x10   :  { %30 = dma.hbm_to_vmem [thread:$0]  %s600_s3, 128, %s28_s28, [#allocation4]  }
  0x11   :  { %485 = dma.done.wait [#allocation4], 128  }
  0x12   :  { %486 = vsyncadd [#allocation4], 4294967168  ;;  %v490_v0 = vmov 0.0   ;;  %vm491_vm0 = vmmov 0   ;;  %v492_v1 = vmov 0   ;;  %vm52_vm1 = vcmask 261120  }
  0x13   :  { %414 = vmatprep.subr.mxu0 %v490_v0  ;;  %419 = vmatprep.subr.mxu1 %v490_v0  ;;  %v50_v2 = vld [vmem:[%s599_s2] sm:$0xff]  ;;  %v51_v3 = vld [vmem:[#allocation3] sm:$0xff]  ;;  %vm46_vm2 = vcmask 64512  }
  0x14   :  { %416 = vmatprep.mubr.msk.f32.mxu0 %vm491_vm0, %v490_v0  ;;  %421 = vmatprep.mubr.msk.f32.mxu1 %vm491_vm0, %v490_v0  ;;  %v48_v4 = vld [vmem:[%s597_s0] sm:$0xff]  ;;  %47 = vst.msk [vmem:[#allocation2] sm:$0xff] %vm46_vm2, %v490_v0 }
  0x15   :  { %434 = vset.pattern.permute.xlu0 %v492_v1  ;;  %415 = vmatpush3.xpose.msk.msra.mxu0 %vm52_vm1, %v50_v2  ;;  %v49_v5 = vld [vmem:[%s598_s1] sm:$0xff] }
  0x16   :  { %420 = vmatpush3.xpose.msk.msra.mxu1 %vm52_vm1, %v51_v3  ;;  %v275_v6 = vld [vmem:[%s601_s4] sm:$0xff]  ;;  %424 = vmatprep.subr.mxu0 %v490_v0 }
  0x17   :  { %281 = vperm.xlu0 %434, %v275_v6   ;;  %v276_v7 = vld [vmem:[%s602_s5] sm:$0xff] }
  0x18   :  { %417 = vmatmul.mubr.msk.f32.vlgmr.msra.gmra.mrb[0].mxu0 %vm52_vm1, %v48_v4  ;;  %v406_v9 = vld [vmem:[%s603_s6] ss:$0 sm:$0xff]  ;;  %s493_s6 = smov [#allocation6]  }
  0x19   :  { %422 = vmatmul.mubr.msk.f32.vlgmr.msra.gmra.mrb[0].mxu1 %vm52_vm1, %v49_v5  ;;  %425 = vmatpush3.xpose.msk.msra.mxu0 %vm52_vm1, %v51_v3  ;;  %v407_v10 = vld [vmem:[%s604_s7] ss:$0 sm:$0xff]  ;;  %s391_s7 = sshll.u32 %s493_s6, 4  ;;  %s392_s7 = int_to_ptr.vmem [resolvable:$true] %s391_s7 }
  0x1a   :  { %426 = vmatprep.mubr.msk.f32.mxu0 %vm491_vm0, %v490_v0  ;;  %s463_s25 = scalar_lea.vmem %s392_s7, 128  ;;  %p468_p9 = scmp.lt.s32.totalorder %s392_s7, %s392_s7 }
  0x1b   :  { %295 = vperm.xlu0 %434, %v276_v7   ;;  %p464_p8 = scmp.ne.s32.totalorder %s392_s7, %s463_s25  ;;  %p469_p10 = scmp.lt.s32.totalorder %s463_s25, %s463_s25 }
  0x1c   :  { %427 = vmatmul.mubr.msk.f32.vlgmr.msra.gmra.mrb[2].mxu0 %vm52_vm1, %v48_v4 }
  0x1d   :  { %p470_p11 = por %p469_p10, %p468_p9 }
  0x1f   :  { %p471_p12 = pnand %p470_p11, %p464_p8 }
  0x96   :  { %v282_v8 = vpop.permute.xlu0 %281 }
  0x97   :  { %v290_v12 = vadd.f32 %v406_v9, %v282_v8  ;;  %v307_v24 = vadd.f32 %v407_v10, %v282_v8 }
  0x9a   :  { %v296_v11 = vpop.permute.xlu0 %295 }
  0x9b   :  { %v304_v13 = vadd.f32 %v407_v10, %v296_v11  ;;  %v355_v10 = vld [vmem:[#allocation2] sm:$0xff] }
  0xeb   :  { %v125_v14 = vpop.f32.mrb[0].mxu0 }
  0xec   :  { %v201_v15 = vpop.f32.mrb[0].mxu1  ;;  %v291_v16 = vmul.f32 2.0, %v125_v14  ;;  %v418_v18 = vpop.f32.mrb[1].mxu0 }
  0xed   :  { %v305_v17 = vmul.f32 2.0, %v201_v15  ;;  %v423_v19 = vpop.f32.mrb[1].mxu1 }
  0xee   :  { %v292_v20 = vsub.f32 %v290_v12, %v291_v16  ;;  %v363_v12 = vlaneseq }
  0xef   :  { %v306_v21 = vsub.f32 %v304_v13, %v305_v17  ;;  %v271_v22 = vpop.f32.mrb[2].mxu0 }
  0xf0   :  { %v314_v23 = vadd.f32 0.8525, %v292_v20  ;;  %v308_v26 = vmul.f32 2.0, %v271_v22  ;;  %v428_v27 = vpop.f32.mrb[3].mxu0  ;;  %v310_v41 = vmul.f32 0.8525, %v292_v20 }
  0xf1   :  { %v328_v25 = vadd.f32 0.8525, %v306_v21  ;;  %v324_v43 = vmul.f32 0.8525, %v306_v21  ;;  %v364_v14 = vshrl.u32 %v363_v12, 7  ;;  %v366_v15 = vand.u32 127, %v363_v12 }
  0xf2   :  { %v315_v28 = vmul.f32 %v314_v23, %v292_v20  ;;  %v309_v30 = vsub.f32 %v307_v24, %v308_v26  ;;  %v311_v44 = vadd.f32 0.06905, %v310_v41 }
  0xf3   :  { %v329_v29 = vmul.f32 %v328_v25, %v306_v21  ;;  %v325_v45 = vadd.f32 0.06905, %v324_v43  ;;  %vm367_vm3 = vcmp.eq.s32.totalorder %v364_v14, %v366_v15 }
  0xf4   :  { %v316_v31 = vadd.f32 0.034525, %v315_v28  ;;  %v342_v33 = vadd.f32 0.8525, %v309_v30  ;;  %v338_v46 = vmul.f32 0.8525, %v309_v30  ;;  %v312_v49 = vmul.f32 %v311_v44, %v292_v20 }
  0xf5   :  { %v330_v32 = vadd.f32 0.034525, %v329_v29  ;;  %v326_v51 = vmul.f32 %v325_v45, %v306_v21 }
  0xf6   :  { %v317_v34 = vmul.f32 %v316_v31, %v292_v20  ;;  %v343_v36 = vmul.f32 %v342_v33, %v309_v30  ;;  %v339_v53 = vadd.f32 0.06905, %v338_v46  ;;  %v313_v57 = vadd.f32 0.000243, %v312_v49 }
  0xf7   :  { %v331_v35 = vmul.f32 %v330_v32, %v306_v21  ;;  %v327_v59 = vadd.f32 0.000243, %v326_v51 }
  0xf8   :  { %v318_v37 = vadd.f32 8.1e-05, %v317_v34  ;;  %v344_v39 = vadd.f32 0.034525, %v343_v36  ;;  %v340_v61 = vmul.f32 %v339_v53, %v309_v30 }
  0xf9   :  { %v332_v38 = vadd.f32 8.1e-05, %v331_v35 }
  0xfa   :  { %435 = vrcp.f32 %v318_v37  ;;  %v345_v40 = vmul.f32 %v344_v39, %v309_v30  ;;  %v341_v5 = vadd.f32 0.000243, %v340_v61 }
  0xfb   :  { %437 = vrcp.f32 %v332_v38 }
  0xfc   :  { %v346_v42 = vadd.f32 8.1e-05, %v345_v40 }
  0xfe   :  { %439 = vrcp.f32 %v346_v42 }
 0x104   :  { %v436_v47 = vpop.eup %435 }
 0x105   :  { %v438_v48 = vpop.eup %437  ;;  %v320_v50 = vmul.f32 %v436_v47, %v318_v37 }
 0x106   :  { %v334_v52 = vmul.f32 %v438_v48, %v332_v38 }
 0x107   :  { %v321_v54 = vsub.f32 2.0, %v320_v50 }
 0x108   :  { %v335_v55 = vsub.f32 2.0, %v334_v52  ;;  %v440_v56 = vpop.eup %439 }
 0x109   :  { %v322_v58 = vmul.f32 %v436_v47, %v321_v54  ;;  %v348_v62 = vmul.f32 %v440_v56, %v346_v42 }
 0x10a   :  { %v336_v60 = vmul.f32 %v438_v48, %v335_v55 }
 0x10b   :  { %v323_v63 = vmul.f32 %v322_v58, %v313_v57  ;;  %v349_v1 = vsub.f32 2.0, %v348_v62 }
 0x10c   :  { %v337_v0 = vmul.f32 %v336_v60, %v327_v59 }
 0x10d   :  { %v373_v2 = vsub.f32 3.0, %v323_v63  ;;  %v350_v6 = vmul.f32 %v440_v56, %v349_v1 }
 0x10e   :  { %v352_v3 = vadd.f32 %v337_v0, %v323_v63  ;;  %v374_v4 = vsub.f32 3.0, %v337_v0 }
 0x10f   :  { %v351_v8 = vmul.f32 %v350_v6, %v341_v5 }
 0x110   :  { %v375_v7 = vadd.f32 %v374_v4, %v373_v2 }
 0x111   :  { %v353_v9 = vmul.f32 2.0, %v351_v8 }
 0x112   :  { %v376_v16 = vsel %vm367_vm3, %v375_v7, 0.0 }
 0x113   :  { %v354_v11 = vsub.f32 %v352_v3, %v353_v9 }
 0x115   :  { %v356_v13 = vadd.f32 %v355_v10, %v354_v11 }
 0x117   :  { %358 = vst.msk [vmem:[#allocation2] sm:$0xff] %vm46_vm2, %v356_v13 }
 0x11e   :  { %v377_v17 = vld [vmem:[#allocation2] sm:$0xff] }
 0x11f   :  { %v378_v18 = vadd.f32 %v377_v17, %v376_v16 }
 0x121   :  { %379 = vst.msk [vmem:[#allocation2] sm:$0xff] %vm46_vm2, %v378_v18 }
 0x128   :  { %v383_v19 = vld [vmem:[#allocation2] sm:$0xff] }
 0x129   :  { %384 = vst.msk [vmem:[#allocation6] sm:$0xff] %vm46_vm2, %v383_v19 }
 0x12a   :  { %474 = shalt.err (!%p471_p12)
}
 0x12b   :  { %s475_s28 = scalar_lea.hbm %s605_s8, 128 }
 0x12c   :  { %p476_p13 = scmp.ne.s32.totalorder %s605_s8, %s475_s28  ;;  %p479_p0 = scmp.lt.u32.totalorder %s475_s28, %s605_s8 }
 0x12e   :  { %p481_p1 = pnand %p479_p0, %p476_p13 }
 0x130   :  { %484 = shalt.err (!%p481_p1)
}
 0x131   :  { %394 = dma.vmem_to_hbm [thread:$0]  %s392_s7, 128, %s605_s8, [#allocation5]  }
 0x132   :  { %487 = dma.done.wait [#allocation5], 128  }
 0x133   :  { %488 = vsyncadd [#allocation5], 4294967168 }
 0x134   :  { %398 = vsyncpa [#allocation4], 1 }
 0x135   :  { %399 = vsyncpa [#allocation5], 1 }

</bundles_post_ra>
